<compile_context>
chip_gen: v7x
topology: tpu7x:2x2x1
jax: 0.10.0
libtpu: 0.0.40
codegen_flags: <defaults>
</compile_context>

<pallas_src>
import jax
import jax.numpy as jnp
from jax.experimental import pallas as pl
from jax.experimental.pallas import tpu as pltpu

C_PAD = 128  # lane-dense channel padding (vreg lane width)


def _round_up(n, m):
    return (n + m - 1) // m * m


# ----------------------------- Pallas kernel -------------------------------


def _make_fused_sage_kernel(n_dst_pads, c_out_final, num_layers):
    """Fused kernel specialized on static per-hop (padded) destination sizes."""

    def kernel(*refs):
        # refs layout:
        #   B_0..B_{L-1}        bf16 [n_dst_pad, n_src_pad]  (edge-count matrix)
        #   invdeg_0..invdeg_{L-1}  f32 [n_dst_pad, 1]
        #   x                   bf16 [n_src_pad0, C_PAD]
        #   Wl_0..Wl_{L-1}      bf16 [C_PAD, C_PAD]
        #   Wr_0..Wr_{L-1}      bf16 [C_PAD, C_PAD]
        #   b_0..b_{L-1}        f32  [1, C_PAD]
        #   o_ref               f32  [n_dst_pad_last, C_PAD]
        L = num_layers
        adj_refs = refs[:L]
        deg_refs = refs[L:2 * L]
        x_ref = refs[2 * L]
        wl_refs = refs[2 * L + 1:3 * L + 1]
        wr_refs = refs[3 * L + 1:4 * L + 1]
        bias_refs = refs[4 * L + 1:5 * L + 1]
        o_ref = refs[5 * L + 1]

        x_bf = x_ref[...]                                   # bf16 activations
        out = None
        for i in range(L):
            n_dst = n_dst_pads[i]
            # mean aggregation = (B @ x) * 1/deg  (bf16 MXU dot, f32 accumulate,
            # f32 degree normalization)
            aggr = jnp.dot(adj_refs[i][...], x_bf,
                           preferred_element_type=jnp.float32) * deg_refs[i][...]
            xt_bf = x_bf[:n_dst]                            # x_target (static slice)
            # lin_l + lin_r as sum of two dots (no lane-axis concat)
            out = (jnp.dot(aggr.astype(jnp.bfloat16), wl_refs[i][...],
                           preferred_element_type=jnp.float32)
                   + jnp.dot(xt_bf, wr_refs[i][...],
                             preferred_element_type=jnp.float32)
                   + bias_refs[i][...])
            if i != L - 1:
                out = jnp.maximum(out, 0.0)
                x_bf = out.astype(jnp.bfloat16)

        # masked log_softmax over the real (unpadded) channels, f32
        col = jax.lax.broadcasted_iota(jnp.int32, out.shape, 1)
        valid = col < c_out_final
        xm = jnp.where(valid, out, -jnp.inf)
        m = jnp.max(xm, axis=-1, keepdims=True)
        s = out - m
        e = jnp.where(valid, jnp.exp(s), 0.0)
        lse = jnp.log(jnp.sum(e, axis=-1, keepdims=True))
        o_ref[...] = jnp.where(valid, s - lse, 0.0)

    return kernel


# ------------------------------- JAX glue ----------------------------------


def build_adjacency(edge_index, size, size_pad):
    """Edge-count matrix B[dst, src] (bf16-exact small ints) + f32 1/deg."""
    n_src, n_dst = size
    n_src_pad, n_dst_pad = size_pad
    src, dst = edge_index[0], edge_index[1]
    cnt = jnp.zeros((n_dst_pad, n_src_pad), jnp.float32).at[dst, src].add(1.0)
    deg = jnp.sum(cnt, axis=1, keepdims=True)
    inv_deg = jnp.where(deg > 0, 1.0 / jnp.maximum(deg, 1.0), 0.0)
    # Small integer counts (< 256) are exactly representable in bf16.
    return cnt.astype(jnp.bfloat16), inv_deg.astype(jnp.float32)


def sage_forward(x, adjs, params):
    """x: [N0, in_channels]; adjs: list of (edge_index[2,E], size=(n_src, n_dst))."""
    num_layers = len(params)
    node_counts = [adjs[0][1][0]] + [size[1] for (_, size) in adjs]
    # n_src of each hop is an adjacency lane dim -> pad to 128 (also a multiple
    # of 16 for bf16 activation sublanes); final dst rows only need x8.
    pad_counts = ([_round_up(n, 128) for n in node_counts[:-1]]
                  + [_round_up(node_counts[-1], 8)])
    c_out_final = params[-1][0].shape[1]

    # --- glue / parameter prep (precompute once per minibatch in production) ---
    adj_mats, inv_degs = [], []
    for i, (edge_index, size) in enumerate(adjs):
        bm, dm = build_adjacency(edge_index, size,
                                 (pad_counts[i], pad_counts[i + 1]))
        adj_mats.append(bm)
        inv_degs.append(dm)

    n0, c_in0 = x.shape
    x_pad = (jnp.zeros((pad_counts[0], C_PAD), jnp.float32)
             .at[:n0, :c_in0].set(x).astype(jnp.bfloat16))

    wls, wrs, bps = [], [], []
    for (w_l, w_r, b) in params:
        c_in, c_out = w_l.shape
        wls.append(jnp.zeros((C_PAD, C_PAD), jnp.float32)
                   .at[:c_in, :c_out].set(w_l).astype(jnp.bfloat16))
        wrs.append(jnp.zeros((C_PAD, C_PAD), jnp.float32)
                   .at[:c_in, :c_out].set(w_r).astype(jnp.bfloat16))
        bps.append(jnp.zeros((1, C_PAD), jnp.float32).at[0, :c_out].set(b))

    inputs = adj_mats + inv_degs + [x_pad] + wls + wrs + bps
    n_out_pad = pad_counts[-1]

    # explicit VMEM budget from the real working set (fits v7x's 64 MiB too)
    total_bytes = sum(int(a.size) * a.dtype.itemsize for a in inputs)
    total_bytes += n_out_pad * C_PAD * 4
    vmem_limit = int(min(64 * 2**20, max(4 * total_bytes, 4 * 2**20)))

    kernel = _make_fused_sage_kernel(tuple(pad_counts[1:]), c_out_final,
                                     num_layers)

    # No grid: every operand is a single whole-array VMEM block (no useless
    # double-buffering for a single-step pipeline).
    out_pad = pl.pallas_call(
        kernel,
        out_shape=jax.ShapeDtypeStruct((n_out_pad, C_PAD), jnp.float32),
        compiler_params=pltpu.CompilerParams(vmem_limit_bytes=vmem_limit),
    )(*inputs)
    return out_pad[:node_counts[-1], :c_out_final]


def sage_forward_ref(x, adjs, params):
    """Pure-jnp reference with matching precision (bf16 MXU operands, f32 acc)."""
    num_layers = len(params)
    x = x.astype(jnp.bfloat16)
    out = None
    for i, (edge_index, size) in enumerate(adjs):
        n_src, n_dst = size
        src, dst = edge_index[0], edge_index[1]
        cnt = jnp.zeros((n_dst, n_src), jnp.float32).at[dst, src].add(1.0)
        deg = jnp.sum(cnt, axis=1, keepdims=True)
        inv_deg = jnp.where(deg > 0, 1.0 / jnp.maximum(deg, 1.0), 0.0)
        w_l, w_r, b = params[i]
        aggr = jnp.dot(cnt.astype(jnp.bfloat16), x,
                       preferred_element_type=jnp.float32) * inv_deg
        xt = x[:n_dst]
        out = (jnp.dot(aggr.astype(jnp.bfloat16), w_l.astype(jnp.bfloat16),
                       preferred_element_type=jnp.float32)
               + jnp.dot(xt, w_r.astype(jnp.bfloat16),
                         preferred_element_type=jnp.float32)
               + b[None, :])
        if i != num_layers - 1:
            out = jnp.maximum(out, 0.0)
            x = out.astype(jnp.bfloat16)
    return jax.nn.log_softmax(out, axis=-1)


# --------------------------------- main -------------------------------------


if __name__ == "__main__":
    key = jax.random.PRNGKey(0)

    in_channels, hidden_channels, out_channels, num_layers = 16, 32, 8, 3
    # node counts per sampling hop (outermost -> seed batch)
    node_counts = [64, 32, 16, 8]

    # deterministic parameter init (SAGEConv: lin_l with bias, lin_r no bias)
    dims = [in_channels] + [hidden_channels] * (num_layers - 1) + [out_channels]
    params = []
    for li in range(num_layers):
        c_in, c_out = dims[li], dims[li + 1]
        key, k1, k2 = jax.random.split(key, 3)
        w_l = (jax.random.normal(k1, (c_in, c_out), jnp.float32)
               / jnp.sqrt(jnp.float32(c_in)))
        w_r = (jax.random.normal(k2, (c_in, c_out), jnp.float32)
               / jnp.sqrt(jnp.float32(c_in)))
        b = jnp.zeros((c_out,), jnp.float32)
        params.append((w_l, w_r, b))

    # input node features
    key, kx = jax.random.split(key)
    x = jax.random.normal(kx, (node_counts[0], in_channels), jnp.float32)

    # synthetic bipartite adjs: (edge_index [2, E], size=(n_src, n_dst))
    adjs = []
    for li in range(num_layers):
        n_src, n_dst = node_counts[li], node_counts[li + 1]
        n_edges = 4 * n_dst
        key, ks, kd = jax.random.split(key, 3)
        src = jax.random.randint(ks, (n_edges,), 0, n_src, jnp.int32)
        dst = jax.random.randint(kd, (n_edges,), 0, n_dst, jnp.int32)
        adjs.append((jnp.stack([src, dst], axis=0), (n_src, n_dst)))

    out = jax.block_until_ready(sage_forward(x, adjs, params))

    ref = sage_forward_ref(x, adjs, params)
    assert out.shape == (node_counts[-1], out_channels)
    assert jnp.allclose(out, ref, atol=2e-3, rtol=2e-3), "mismatch vs reference"

    print("KERNEL_OK")
</pallas_src>

<mosaic_0001>
module attributes {stable_mosaic.version = 11 : i64} {
  func.func @kernel(%arg0: memref<128x128xbf16, #tpu.memory_space<vmem>>, %arg1: memref<128x128xbf16, #tpu.memory_space<vmem>>, %arg2: memref<8x128xbf16, #tpu.memory_space<vmem>>, %arg3: memref<128x1xf32, #tpu.memory_space<vmem>>, %arg4: memref<128x1xf32, #tpu.memory_space<vmem>>, %arg5: memref<8x1xf32, #tpu.memory_space<vmem>>, %arg6: memref<128x128xbf16, #tpu.memory_space<vmem>>, %arg7: memref<128x128xbf16, #tpu.memory_space<vmem>>, %arg8: memref<128x128xbf16, #tpu.memory_space<vmem>>, %arg9: memref<128x128xbf16, #tpu.memory_space<vmem>>, %arg10: memref<128x128xbf16, #tpu.memory_space<vmem>>, %arg11: memref<128x128xbf16, #tpu.memory_space<vmem>>, %arg12: memref<128x128xbf16, #tpu.memory_space<vmem>>, %arg13: memref<1x128xf32, #tpu.memory_space<vmem>>, %arg14: memref<1x128xf32, #tpu.memory_space<vmem>>, %arg15: memref<1x128xf32, #tpu.memory_space<vmem>>, %arg16: memref<8x128xf32, #tpu.memory_space<vmem>>) attributes {dimension_semantics = [], scalar_prefetch = 0 : i64, scratch_operands = 0 : i64, tpu.core_type = #tpu.core_type<tc>} {
    %c0 = arith.constant 0 : index
    %c0_0 = arith.constant 0 : index
    %0 = vector.load %arg6[%c0, %c0_0] : memref<128x128xbf16, #tpu.memory_space<vmem>>, vector<128x128xbf16>
    %c0_1 = arith.constant 0 : index
    %c0_2 = arith.constant 0 : index
    %1 = vector.load %arg0[%c0_1, %c0_2] : memref<128x128xbf16, #tpu.memory_space<vmem>>, vector<128x128xbf16>
    %cst = arith.constant dense<0.000000e+00> : vector<128x128xf32>
    %2 = tpu.matmul %1, %0, %cst {dimension_numbers = #tpu.dot_dimension_numbers<[1], [0], [0], [1], [0, 0, 1, 1], [], []>} : vector<128x128xbf16>, vector<128x128xbf16>, vector<128x128xf32> -> vector<128x128xf32>
    %c0_3 = arith.constant 0 : index
    %c0_4 = arith.constant 0 : index
    %3 = vector.load %arg3[%c0_3, %c0_4] : memref<128x1xf32, #tpu.memory_space<vmem>>, vector<128x1xf32>
    %4 = vector.broadcast %3 : vector<128x1xf32> to vector<128x128xf32>
    %5 = arith.mulf %2, %4 : vector<128x128xf32>
    %6 = arith.truncf %5 : vector<128x128xf32> to vector<128x128xbf16>
    %c0_5 = arith.constant 0 : index
    %c0_6 = arith.constant 0 : index
    %7 = vector.load %arg7[%c0_5, %c0_6] : memref<128x128xbf16, #tpu.memory_space<vmem>>, vector<128x128xbf16>
    %cst_7 = arith.constant dense<0.000000e+00> : vector<128x128xf32>
    %8 = tpu.matmul %6, %7, %cst_7 {dimension_numbers = #tpu.dot_dimension_numbers<[1], [0], [0], [1], [0, 0, 1, 1], [], []>} : vector<128x128xbf16>, vector<128x128xbf16>, vector<128x128xf32> -> vector<128x128xf32>
    %c0_8 = arith.constant 0 : index
    %c0_9 = arith.constant 0 : index
    %9 = vector.load %arg10[%c0_8, %c0_9] : memref<128x128xbf16, #tpu.memory_space<vmem>>, vector<128x128xbf16>
    %cst_10 = arith.constant dense<0.000000e+00> : vector<128x128xf32>
    %10 = tpu.matmul %0, %9, %cst_10 {dimension_numbers = #tpu.dot_dimension_numbers<[1], [0], [0], [1], [0, 0, 1, 1], [], []>} : vector<128x128xbf16>, vector<128x128xbf16>, vector<128x128xf32> -> vector<128x128xf32>
    %11 = arith.addf %8, %10 : vector<128x128xf32>
    %c0_11 = arith.constant 0 : index
    %c0_12 = arith.constant 0 : index
    %12 = vector.load %arg13[%c0_11, %c0_12] : memref<1x128xf32, #tpu.memory_space<vmem>>, vector<1x128xf32>
    %13 = vector.broadcast %12 : vector<1x128xf32> to vector<128x128xf32>
    %14 = arith.addf %11, %13 : vector<128x128xf32>
    %cst_13 = arith.constant 0.000000e+00 : f32
    %15 = vector.broadcast %cst_13 : f32 to vector<128x128xf32>
    %16 = arith.maximumf %14, %15 : vector<128x128xf32>
    %17 = arith.truncf %16 : vector<128x128xf32> to vector<128x128xbf16>
    %c0_14 = arith.constant 0 : index
    %c0_15 = arith.constant 0 : index
    %18 = vector.load %arg1[%c0_14, %c0_15] : memref<128x128xbf16, #tpu.memory_space<vmem>>, vector<128x128xbf16>
    %cst_16 = arith.constant dense<0.000000e+00> : vector<128x128xf32>
    %19 = tpu.matmul %18, %17, %cst_16 {dimension_numbers = #tpu.dot_dimension_numbers<[1], [0], [0], [1], [0, 0, 1, 1], [], []>} : vector<128x128xbf16>, vector<128x128xbf16>, vector<128x128xf32> -> vector<128x128xf32>
    %c0_17 = arith.constant 0 : index
    %c0_18 = arith.constant 0 : index
    %20 = vector.load %arg4[%c0_17, %c0_18] : memref<128x1xf32, #tpu.memory_space<vmem>>, vector<128x1xf32>
    %21 = vector.broadcast %20 : vector<128x1xf32> to vector<128x128xf32>
    %22 = arith.mulf %19, %21 : vector<128x128xf32>
    %23 = arith.truncf %22 : vector<128x128xf32> to vector<128x128xbf16>
    %c0_19 = arith.constant 0 : index
    %c0_20 = arith.constant 0 : index
    %24 = vector.load %arg8[%c0_19, %c0_20] : memref<128x128xbf16, #tpu.memory_space<vmem>>, vector<128x128xbf16>
    %cst_21 = arith.constant dense<0.000000e+00> : vector<128x128xf32>
    %25 = tpu.matmul %23, %24, %cst_21 {dimension_numbers = #tpu.dot_dimension_numbers<[1], [0], [0], [1], [0, 0, 1, 1], [], []>} : vector<128x128xbf16>, vector<128x128xbf16>, vector<128x128xf32> -> vector<128x128xf32>
    %c0_22 = arith.constant 0 : index
    %c0_23 = arith.constant 0 : index
    %26 = vector.load %arg11[%c0_22, %c0_23] : memref<128x128xbf16, #tpu.memory_space<vmem>>, vector<128x128xbf16>
    %cst_24 = arith.constant dense<0.000000e+00> : vector<128x128xf32>
    %27 = tpu.matmul %17, %26, %cst_24 {dimension_numbers = #tpu.dot_dimension_numbers<[1], [0], [0], [1], [0, 0, 1, 1], [], []>} : vector<128x128xbf16>, vector<128x128xbf16>, vector<128x128xf32> -> vector<128x128xf32>
    %28 = arith.addf %25, %27 : vector<128x128xf32>
    %c0_25 = arith.constant 0 : index
    %c0_26 = arith.constant 0 : index
    %29 = vector.load %arg14[%c0_25, %c0_26] : memref<1x128xf32, #tpu.memory_space<vmem>>, vector<1x128xf32>
    %30 = vector.broadcast %29 : vector<1x128xf32> to vector<128x128xf32>
    %31 = arith.addf %28, %30 : vector<128x128xf32>
    %cst_27 = arith.constant 0.000000e+00 : f32
    %32 = vector.broadcast %cst_27 : f32 to vector<128x128xf32>
    %33 = arith.maximumf %31, %32 : vector<128x128xf32>
    %34 = arith.truncf %33 : vector<128x128xf32> to vector<128x128xbf16>
    %c0_28 = arith.constant 0 : index
    %c0_29 = arith.constant 0 : index
    %35 = vector.load %arg2[%c0_28, %c0_29] : memref<8x128xbf16, #tpu.memory_space<vmem>>, vector<8x128xbf16>
    %cst_30 = arith.constant dense<0.000000e+00> : vector<8x128xf32>
    %36 = tpu.matmul %35, %34, %cst_30 {dimension_numbers = #tpu.dot_dimension_numbers<[1], [0], [0], [1], [0, 0, 1, 1], [], []>} : vector<8x128xbf16>, vector<128x128xbf16>, vector<8x128xf32> -> vector<8x128xf32>
    %c0_31 = arith.constant 0 : index
    %c0_32 = arith.constant 0 : index
    %37 = vector.load %arg5[%c0_31, %c0_32] : memref<8x1xf32, #tpu.memory_space<vmem>>, vector<8x1xf32>
    %38 = vector.broadcast %37 : vector<8x1xf32> to vector<8x128xf32>
    %39 = arith.mulf %36, %38 : vector<8x128xf32>
    %40 = vector.extract_strided_slice %34 {offsets = [0, 0], sizes = [8, 128], strides = [1, 1]} : vector<128x128xbf16> to vector<8x128xbf16>
    %41 = arith.truncf %39 : vector<8x128xf32> to vector<8x128xbf16>
    %c0_33 = arith.constant 0 : index
    %c0_34 = arith.constant 0 : index
    %42 = vector.load %arg9[%c0_33, %c0_34] : memref<128x128xbf16, #tpu.memory_space<vmem>>, vector<128x128xbf16>
    %cst_35 = arith.constant dense<0.000000e+00> : vector<8x128xf32>
    %43 = tpu.matmul %41, %42, %cst_35 {dimension_numbers = #tpu.dot_dimension_numbers<[1], [0], [0], [1], [0, 0, 1, 1], [], []>} : vector<8x128xbf16>, vector<128x128xbf16>, vector<8x128xf32> -> vector<8x128xf32>
    %c0_36 = arith.constant 0 : index
    %c0_37 = arith.constant 0 : index
    %44 = vector.load %arg12[%c0_36, %c0_37] : memref<128x128xbf16, #tpu.memory_space<vmem>>, vector<128x128xbf16>
    %cst_38 = arith.constant dense<0.000000e+00> : vector<8x128xf32>
    %45 = tpu.matmul %40, %44, %cst_38 {dimension_numbers = #tpu.dot_dimension_numbers<[1], [0], [0], [1], [0, 0, 1, 1], [], []>} : vector<8x128xbf16>, vector<128x128xbf16>, vector<8x128xf32> -> vector<8x128xf32>
    %46 = arith.addf %43, %45 : vector<8x128xf32>
    %c0_39 = arith.constant 0 : index
    %c0_40 = arith.constant 0 : index
    %47 = vector.load %arg15[%c0_39, %c0_40] : memref<1x128xf32, #tpu.memory_space<vmem>>, vector<1x128xf32>
    %48 = vector.broadcast %47 : vector<1x128xf32> to vector<8x128xf32>
    %49 = arith.addf %46, %48 : vector<8x128xf32>
    %50 = tpu.iota {dimensions = array<i32: 1>} : vector<8x128xi32>
    %c8_i32 = arith.constant 8 : i32
    %51 = vector.broadcast %c8_i32 : i32 to vector<8x128xi32>
    %52 = arith.cmpi slt, %50, %51 : vector<8x128xi32>
    %cst_41 = arith.constant 0xFF800000 : f32
    %53 = vector.broadcast %cst_41 : f32 to vector<8x128xf32>
    %54 = arith.select %52, %49, %53 : vector<8x128xi1>, vector<8x128xf32>
    %cst_42 = arith.constant dense<0xFF800000> : vector<8xf32>
    %55 = vector.multi_reduction <maximumf>, %54, %cst_42 [1] : vector<8x128xf32> to vector<8xf32>
    %56 = vector.shape_cast %55 : vector<8xf32> to vector<8x1xf32>
    %57 = vector.broadcast %56 : vector<8x1xf32> to vector<8x128xf32>
    %58 = arith.subf %49, %57 : vector<8x128xf32>
    %59 = math.exp %58 : vector<8x128xf32>
    %cst_43 = arith.constant 0.000000e+00 : f32
    %60 = vector.broadcast %cst_43 : f32 to vector<8x128xf32>
    %61 = arith.select %52, %59, %60 : vector<8x128xi1>, vector<8x128xf32>
    %cst_44 = arith.constant dense<0.000000e+00> : vector<8xf32>
    %62 = vector.multi_reduction <add>, %61, %cst_44 [1] : vector<8x128xf32> to vector<8xf32>
    %63 = vector.shape_cast %62 : vector<8xf32> to vector<8x1xf32>
    %64 = math.log %63 : vector<8x1xf32>
    %65 = vector.broadcast %64 : vector<8x1xf32> to vector<8x128xf32>
    %66 = arith.subf %58, %65 : vector<8x128xf32>
    %cst_45 = arith.constant 0.000000e+00 : f32
    %67 = vector.broadcast %cst_45 : f32 to vector<8x128xf32>
    %68 = arith.select %52, %66, %67 : vector<8x128xi1>, vector<8x128xf32>
    %c0_46 = arith.constant 0 : index
    %c0_47 = arith.constant 0 : index
    %69 = vector.load %arg16[%c0_46, %c0_47] : memref<8x128xf32, #tpu.memory_space<vmem>>, vector<8x128xf32>
    tpu.vector_store %arg16[%c0_46, %c0_47], %68 {strides = array<i32>} : memref<8x128xf32, #tpu.memory_space<vmem>>, vector<8x128xf32>,
    return
  }
}

</mosaic_0001>

<bundles_post_ra>
// kernel: tpu_custom_call.1
= control target key start
LH: loop header
LB: loop body
LE: loop exit
PB: predicated region body
PF: predicated region fallthrough
CT: control target
= control target key end

     0   :  { %s3013_s0 = inlined_call_operand.vmem [shape: bf16[128,128], index: 0, kind: input, shape index: {}]   ;;  %s3014_s1 = inlined_call_operand.vmem [shape: bf16[128,128], index: 1, kind: input, shape index: {}]   ;;  %s3015_s2 = inlined_call_operand.vmem [shape: bf16[8,128], index: 2, kind: input, shape index: {}]   ;;  %s3016_s3 = inlined_call_operand.vmem [shape: f32[128,1], index: 3, kind: input, shape index: {}]   ;;  %s3017_s4 = inlined_call_operand.vmem [shape: f32[128,1], index: 4, kind: input, shape index: {}]   ;;  %s3018_s5 = inlined_call_operand.vmem [shape: f32[8,1], index: 5, kind: input, shape index: {}]   ;;  %s3019_s6 = inlined_call_operand.vmem [shape: bf16[128,128], index: 6, kind: input, shape index: {}]   ;;  %s3020_s7 = inlined_call_operand.vmem [shape: bf16[128,128], index: 7, kind: input, shape index: {}]   ;;  %s3021_s8 = inlined_call_operand.hbm [shape: bf16[128,128], index: 8, kind: input, shape index: {}]   ;;  %s3022_s9 = inlined_call_operand.hbm [shape: bf16[128,128], index: 9, kind: input, shape index: {}]   ;;  %s3023_s10 = inlined_call_operand.hbm [shape: bf16[128,128], index: 10, kind: input, shape index: {}]   ;;  %s3024_s11 = inlined_call_operand.hbm [shape: bf16[128,128], index: 11, kind: input, shape index: {}]   ;;  %s3025_s12 = inlined_call_operand.hbm [shape: bf16[128,128], index: 12, kind: input, shape index: {}]   ;;  %s3026_s13 = inlined_call_operand.vmem [shape: f32[1,128], index: 13, kind: input, shape index: {}]   ;;  %s3027_s14 = inlined_call_operand.vmem [shape: f32[1,128], index: 14, kind: input, shape index: {}]   ;;  %s3028_s15 = inlined_call_operand.vmem [shape: f32[1,128], index: 15, kind: input, shape index: {}]   ;;  %s3029_s16 = inlined_call_operand.hbm [shape: f32[8,128], index: 16, kind: output, shape index: {}]  }
   0x1   :  { %3031 = sst [smem:[#allocation16_spill]] %s3013_s0 }
   0x2   :  { %21 = vsyncpa [#allocation3], 0 }
   0x3   :  { %22 = vsyncpa [#allocation6], 0 }
   0x4   :  { %23 = vsyncpa [#allocation9], 0 }
   0x5   :  { %24 = vsyncpa [#allocation4], 0  ;;  %s2497_s21 = smov [#allocation5]   ;;  %s2498_s23 = smov [#allocation8]  }
   0x6   :  { %s58_s22 = sshll.u32 %s2497_s21, 4  ;;  %s82_s24 = sshll.u32 %s2498_s23, 4  ;;  %s59_s22 = int_to_ptr.vmem [resolvable:$true] %s58_s22  ;;  %s2593_s24 = int_to_ptr.vmem [resolvable:$true] %s82_s24 }
   0x7   :  { %s2357_s27 = scalar_lea.hbm %s3022_s9, 1024 }
   0x8   :  { %p2358_p0 = scmp.ne.s32.totalorder %s3022_s9, %s2357_s27  ;;  %p2361_p1 = scmp.lt.u32.totalorder %s2357_s27, %s3022_s9 }
   0xa   :  { %p2363_p2 = pnand %p2361_p1, %p2358_p0 }
   0xc   :  { %2366 = shalt.err (!%p2363_p2)
}
   0xd   :  { %s2367_s17 = scalar_lea.vmem %s59_s22, 1024  ;;  %p2372_p4 = scmp.lt.s32.totalorder %s59_s22, %s59_s22 }
   0xe   :  { %p2368_p3 = scmp.ne.s32.totalorder %s59_s22, %s2367_s17  ;;  %p2373_p5 = scmp.lt.s32.totalorder %s2367_s17, %s2367_s17 }
  0x10   :  { %p2374_p6 = por %p2373_p5, %p2372_p4 }
  0x12   :  { %p2375_p7 = pnand %p2374_p6, %p2368_p3 }
  0x14   :  { %2378 = shalt.err (!%p2375_p7)
}
  0x15   :  { %s2499_s18 = smov 64   ;;  %s2500_s19 = smov 4  }
  0x16   :  { %64 = dma.hbm_to_vmem [thread:$0]  %s3022_s9, 1024, %s59_s22, [#allocation6], %s2499_s18, %s2499_s18, %s2500_s19  }
  0x17   :  { %s2379_s26 = scalar_lea.hbm %s3024_s11, 1024 }
  0x18   :  { %p2380_p8 = scmp.ne.s32.totalorder %s3024_s11, %s2379_s26  ;;  %p2383_p9 = scmp.lt.u32.totalorder %s2379_s26, %s3024_s11 }
  0x1a   :  { %p2385_p10 = pnand %p2383_p9, %p2380_p8 }
  0x1c   :  { %2388 = shalt.err (!%p2385_p10)
}
  0x1d   :  { %s2389_s0 = scalar_lea.vmem %s2593_s24, 1024  ;;  %p2394_p12 = scmp.lt.s32.totalorder %s2593_s24, %s2593_s24 }
  0x1e   :  { %p2390_p11 = scmp.ne.s32.totalorder %s2593_s24, %s2389_s0  ;;  %p2395_p13 = scmp.lt.s32.totalorder %s2389_s0, %s2389_s0 }
  0x20   :  { %p2396_p0 = por %p2395_p13, %p2394_p12 }
  0x22   :  { %p2397_p1 = pnand %p2396_p0, %p2390_p11 }
  0x24   :  { %2400 = shalt.err (!%p2397_p1)
}
  0x25   :  { %88 = dma.hbm_to_vmem [thread:$0]  %s3024_s11, 1024, %s2593_s24, [#allocation9], %s2499_s18, %s2499_s18, %s2500_s19  }
  0x26   :  { %s2501_s17 = smov [#allocation2]   ;;  %s2502_s21 = smov [#allocation7]  }
  0x27   :  { %s46_s20 = sshll.u32 %s2501_s17, 4  ;;  %s70_s23 = sshll.u32 %s2502_s21, 4  ;;  %s47_s20 = int_to_ptr.vmem [resolvable:$true] %s46_s20  ;;  %s2630_s23 = int_to_ptr.vmem [resolvable:$true] %s70_s23 }
  0x28   :  { %s2401_s27 = scalar_lea.hbm %s3021_s8, 1024 }
  0x29   :  { %p2402_p2 = scmp.ne.s32.totalorder %s3021_s8, %s2401_s27  ;;  %p2405_p3 = scmp.lt.u32.totalorder %s2401_s27, %s3021_s8 }
  0x2b   :  { %p2407_p4 = pnand %p2405_p3, %p2402_p2 }
  0x2d   :  { %2410 = shalt.err (!%p2407_p4)
}
  0x2e   :  { %s2411_s11 = scalar_lea.vmem %s47_s20, 1024  ;;  %p2416_p6 = scmp.lt.s32.totalorder %s47_s20, %s47_s20 }
  0x2f   :  { %p2412_p5 = scmp.ne.s32.totalorder %s47_s20, %s2411_s11  ;;  %p2417_p7 = scmp.lt.s32.totalorder %s2411_s11, %s2411_s11 }
  0x31   :  { %p2418_p8 = por %p2417_p7, %p2416_p6 }
  0x33   :  { %p2419_p9 = pnand %p2418_p8, %p2412_p5 }
  0x35   :  { %2422 = shalt.err (!%p2419_p9)
}
  0x36   :  { %52 = dma.hbm_to_vmem [thread:$0]  %s3021_s8, 1024, %s47_s20, [#allocation3], %s2499_s18, %s2499_s18, %s2500_s19  }
  0x37   :  { %s2423_s21 = scalar_lea.hbm %s3023_s10, 1024 }
  0x38   :  { %p2424_p10 = scmp.ne.s32.totalorder %s3023_s10, %s2423_s21  ;;  %p2427_p11 = scmp.lt.u32.totalorder %s2423_s21, %s3023_s10 }
  0x3a   :  { %p2429_p12 = pnand %p2427_p11, %p2424_p10 }
  0x3c   :  { %2432 = shalt.err (!%p2429_p12)
}
  0x3d   :  { %s2433_s29 = scalar_lea.vmem %s2630_s23, 1024  ;;  %p2438_p0 = scmp.lt.s32.totalorder %s2630_s23, %s2630_s23 }
  0x3e   :  { %p2434_p13 = scmp.ne.s32.totalorder %s2630_s23, %s2433_s29  ;;  %p2439_p1 = scmp.lt.s32.totalorder %s2433_s29, %s2433_s29 }
  0x40   :  { %p2440_p2 = por %p2439_p1, %p2438_p0 }
  0x42   :  { %p2441_p3 = pnand %p2440_p2, %p2434_p13 }
  0x44   :  { %2444 = shalt.err (!%p2441_p3)
}
  0x45   :  { %76 = dma.hbm_to_vmem [thread:$0]  %s3023_s10, 1024, %s2630_s23, [#allocation6], %s2499_s18, %s2499_s18, %s2500_s19  }
  0x46   :  { %s2503_s30 = smov [#allocation10]   ;;  %s2445_s9 = scalar_lea.hbm %s3025_s12, 1024 }
  0x47   :  { %s94_s0 = sshll.u32 %s2503_s30, 4  ;;  %p2446_p4 = scmp.ne.s32.totalorder %s3025_s12, %s2445_s9  ;;  %s95_s0 = int_to_ptr.vmem [resolvable:$true] %s94_s0 }
  0x48   :  { %p2449_p5 = scmp.lt.u32.totalorder %s2445_s9, %s3025_s12 }
  0x4a   :  { %p2451_p6 = pnand %p2449_p5, %p2446_p4 }
  0x4c   :  { %2454 = shalt.err (!%p2451_p6)
}
  0x4d   :  { %s2455_s26 = scalar_lea.vmem %s95_s0, 1024  ;;  %p2460_p8 = scmp.lt.s32.totalorder %s95_s0, %s95_s0 }
  0x4e   :  { %p2456_p7 = scmp.ne.s32.totalorder %s95_s0, %s2455_s26  ;;  %p2461_p9 = scmp.lt.s32.totalorder %s2455_s26, %s2455_s26 }
  0x50   :  { %p2462_p10 = por %p2461_p9, %p2460_p8 }
  0x52   :  { %p2463_p11 = pnand %p2462_p10, %p2456_p7 }
  0x54   :  { %2466 = shalt.err (!%p2463_p11)
}
  0x55   :  { %100 = dma.hbm_to_vmem [thread:$0]  %s3025_s12, 1024, %s95_s0, [#allocation9], %s2499_s18, %s2499_s18, %s2500_s19  }
  0x56   :  { %2489 = dma.done.wait [#allocation3], 1024  }
  0x57   :  { %2490 = vsyncadd [#allocation3], 4294966272 }
  0x58   :  { %2491 = dma.done.wait [#allocation6], 2048  }
  0x59   :  { %2492 = vsyncadd [#allocation6], 4294965248 }
  0x5a   :  { %2493 = dma.done.wait [#allocation9], 2048  }
  0x5b   :  { %2494 = vsyncadd [#allocation9], 4294965248  ;;  %v2504_v0 = vmov 0   ;;  %v2281_v1 = vld [vmem:[%s3019_s6] sm:$0xff]   ;;  %v2688_v2 = vld [vmem:[%s3019_s6 + $0x8] sm:$0xff]   ;;  %s3032_s11 = sld [smem:[#allocation16_spill]] }
  0x5c   :  { %2279 = vset.pattern.permute.xlu0 %v2504_v0  ;;  %2280 = vset.pattern.permute.xlu1 %v2504_v0  ;;  %v2694_v3 = vld [vmem:[%s3019_s6 + $0x10] sm:$0xff]   ;;  %v2700_v4 = vld [vmem:[%s3019_s6 + $0x18] sm:$0xff]   ;;  %v2711_v6 = vld [vmem:[%s3019_s6 + $0x20] sm:$0xff]   ;;  %vm2506_vm0 = vmmov 0  }
  0x5d   :  { %1984 = vmatprep.subr.bf16.mxu0 %v2281_v1  ;;  %2032 = vmatprep.mubr.bf16.mxu1 %v2281_v1  ;;  %v348_v7 = vld [vmem:[%s3016_s3] sm:$0xff]  ;;  %v2720_v8 = vld [vmem:[%s3019_s6 + $0x28] sm:$0xff]   ;;  %v350_v9 = vld [vmem:[%s3016_s3 + $0x10] sm:$0xff] }
  0x5e   :  { %1985 = vmatpush3.bf16.msra.mxu0 %v2281_v1  ;;  %366 = vperm.xlu0 %2279, %v348_v7   ;;  %v349_v10 = vld [vmem:[%s3016_s3 + $0x8] sm:$0xff]  ;;  %v351_v11 = vld [vmem:[%s3016_s3 + $0x18] sm:$0xff]  ;;  %v2737_v12 = vld [vmem:[%s3019_s6 + $0x30] sm:$0xff]  }
  0x5f   :  { %1986 = vmatprep.subr.bf16.mxu0 %v2688_v2  ;;  %376 = vperm.xlu1 %2280, %v350_v9   ;;  %v352_v13 = vld [vmem:[%s3016_s3 + $0x20] sm:$0xff]  ;;  %v353_v14 = vld [vmem:[%s3016_s3 + $0x28] sm:$0xff]  ;;  %v2750_v15 = vld [vmem:[%s3019_s6 + $0x38] sm:$0xff]  }
  0x60   :  { %v354_v16 = vld [vmem:[%s3016_s3 + $0x30] sm:$0xff]  ;;  %v355_v17 = vld [vmem:[%s3016_s3 + $0x38] sm:$0xff]  ;;  %v356_v18 = vld [vmem:[%s3016_s3 + $0x40] sm:$0xff] }
  0x61   :  { %v2289_v5 = vld [vmem:[%s3032_s11] sm:$0xff]   ;;  %v357_v19 = vld [vmem:[%s3016_s3 + $0x48] sm:$0xff]  ;;  %v2291_v23 = vld [vmem:[%s3032_s11 + $0x10] sm:$0xff]  }
  0x62   :  { %1987 = vmatpush3.bf16.msra.mxu0 %v2688_v2  ;;  %2000 = vmatprep.mubr.bf16.mxu0 %v2289_v5  ;;  %v2297_v20 = vld [vmem:[#allocation7] sm:$0xff]   ;;  %v2290_v21 = vld [vmem:[%s3032_s11 + $0x8] sm:$0xff]   ;;  %v358_v24 = vld [vmem:[%s3016_s3 + $0x50] sm:$0xff] }
  0x63   :  { %1988 = vmatprep.subr.bf16.mxu0 %v2694_v3  ;;  %371 = vperm.xlu0 %2279, %v349_v10   ;;  %v2298_v22 = vld [vmem:[#allocation7 + $0x8] sm:$0xff]   ;;  %v2299_v25 = vld [vmem:[#allocation7 + $0x10] sm:$0xff]   ;;  %v359_v26 = vld [vmem:[%s3016_s3 + $0x58] sm:$0xff] }
  0x64   :  { %381 = vperm.xlu1 %2280, %v351_v11   ;;  %2016 = vmatprep.subr.bf16.mxu1 %v2297_v20  ;;  %v360_v27 = vld [vmem:[%s3016_s3 + $0x60] sm:$0xff]  ;;  %v2300_v28 = vld [vmem:[#allocation7 + $0x18] sm:$0xff]   ;;  %v361_v29 = vld [vmem:[%s3016_s3 + $0x68] sm:$0xff] }
  0x65   :  { %2017 = vmatpush3.bf16.msra.mxu1 %v2297_v20  ;;  %v2292_v30 = vld [vmem:[%s3032_s11 + $0x18] sm:$0xff]   ;;  %v2293_v31 = vld [vmem:[%s3032_s11 + $0x20] sm:$0xff]   ;;  %v362_v32 = vld [vmem:[%s3016_s3 + $0x70] sm:$0xff] }
  0x66   :  { %1989 = vmatpush3.bf16.msra.mxu0 %v2694_v3  ;;  %2018 = vmatprep.subr.bf16.mxu1 %v2298_v22  ;;  %v2301_v33 = vld [vmem:[#allocation7 + $0x20] sm:$0xff]   ;;  %v363_v34 = vld [vmem:[%s3016_s3 + $0x78] sm:$0xff]  ;;  %v2302_v36 = vld [vmem:[#allocation7 + $0x28] sm:$0xff]  }
  0x67   :  { %1990 = vmatprep.subr.bf16.mxu0 %v2700_v4  ;;  %386 = vperm.xlu0 %2279, %v352_v13   ;;  %v998_v35 = vld [vmem:[%s3017_s4] sm:$0xff]  ;;  %v999_v37 = vld [vmem:[%s3017_s4 + $0x8] sm:$0xff]  ;;  %v2295_v39 = vld [vmem:[%s3032_s11 + $0x30] sm:$0xff]  }
  0x68   :  { %391 = vperm.xlu1 %2280, %v353_v14   ;;  %v2294_v38 = vld [vmem:[%s3032_s11 + $0x28] sm:$0xff]   ;;  %v1000_v40 = vld [vmem:[%s3017_s4 + $0x10] sm:$0xff]  ;;  %v1001_v42 = vld [vmem:[%s3017_s4 + $0x18] sm:$0xff] }
  0x69   :  { %2019 = vmatpush3.bf16.msra.mxu1 %v2298_v22  ;;  %v2303_v41 = vld [vmem:[#allocation7 + $0x30] sm:$0xff]   ;;  %v1002_v43 = vld [vmem:[%s3017_s4 + $0x20] sm:$0xff]  ;;  %v2304_v44 = vld [vmem:[#allocation7 + $0x38] sm:$0xff]  }
  0x6a   :  { %1991 = vmatpush3.bf16.msra.mxu0 %v2700_v4  ;;  %2020 = vmatprep.subr.bf16.mxu1 %v2299_v25  ;;  %v1003_v45 = vld [vmem:[%s3017_s4 + $0x28] sm:$0xff]  ;;  %v2296_v46 = vld [vmem:[%s3032_s11 + $0x38] sm:$0xff]   ;;  %v1004_v47 = vld [vmem:[%s3017_s4 + $0x30] sm:$0xff] }
  0x6b   :  { %1992 = vmatprep.subr.bf16.mxu0 %v2711_v6  ;;  %396 = vperm.xlu0 %2279, %v354_v16   ;;  %v2305_v48 = vld [vmem:[%s3020_s7] sm:$0xff]   ;;  %v1005_v49 = vld [vmem:[%s3017_s4 + $0x38] sm:$0xff]  ;;  %v2306_v51 = vld [vmem:[%s3020_s7 + $0x8] sm:$0xff]  }
  0x6c   :  { %401 = vperm.xlu1 %2280, %v355_v17   ;;  %v1006_v50 = vld [vmem:[%s3017_s4 + $0x40] sm:$0xff]  ;;  %v1007_v52 = vld [vmem:[%s3017_s4 + $0x48] sm:$0xff]  ;;  %v1008_v53 = vld [vmem:[%s3017_s4 + $0x50] sm:$0xff] }
  0x6d   :  { %2021 = vmatpush3.bf16.msra.mxu1 %v2299_v25  ;;  %v2307_v54 = vld [vmem:[%s3020_s7 + $0x10] sm:$0xff]   ;;  %v1009_v55 = vld [vmem:[%s3017_s4 + $0x58] sm:$0xff]  ;;  %v1010_v57 = vld [vmem:[%s3017_s4 + $0x60] sm:$0xff] }
  0x6e   :  { %1993 = vmatpush3.bf16.msra.mxu0 %v2711_v6  ;;  %2022 = vmatprep.subr.bf16.mxu1 %v2300_v28  ;;  %v2308_v56 = vld [vmem:[%s3020_s7 + $0x18] sm:$0xff]   ;;  %v1011_v58 = vld [vmem:[%s3017_s4 + $0x68] sm:$0xff]  ;;  %v2309_v59 = vld [vmem:[%s3020_s7 + $0x20] sm:$0xff]  }
  0x6f   :  { %1994 = vmatprep.subr.bf16.mxu0 %v2720_v8  ;;  %406 = vperm.xlu0 %2279, %v356_v18   ;;  %v1012_v60 = vld [vmem:[%s3017_s4 + $0x70] sm:$0xff]  ;;  %v1013_v61 = vld [vmem:[%s3017_s4 + $0x78] sm:$0xff]  ;;  %v2310_v62 = vld [vmem:[%s3020_s7 + $0x28] sm:$0xff]  }
  0x70   :  { %411 = vperm.xlu1 %2280, %v357_v19   ;;  %v1528_v63 = vld [vmem:[%s3018_s5] sm:$0xff]  ;;  %v2311_v0 = vld [vmem:[%s3020_s7 + $0x30] sm:$0xff]   ;;  %v2312_v1 = vld [vmem:[%s3020_s7 + $0x38] sm:$0xff]  }
  0x71   :  { %2023 = vmatpush3.bf16.msra.mxu1 %v2300_v28 }
  0x72   :  { %1995 = vmatpush3.bf16.msra.mxu0 %v2720_v8  ;;  %2024 = vmatprep.subr.bf16.mxu1 %v2301_v33 }
  0x73   :  { %1996 = vmatprep.subr.bf16.mxu0 %v2737_v12  ;;  %416 = vperm.xlu0 %2279, %v358_v24  }
  0x74   :  { %421 = vperm.xlu1 %2280, %v359_v26  }
  0x75   :  { %2025 = vmatpush3.bf16.msra.mxu1 %v2301_v33 }
  0x76   :  { %1997 = vmatpush3.bf16.msra.mxu0 %v2737_v12  ;;  %2026 = vmatprep.subr.bf16.mxu1 %v2302_v36 }
  0x77   :  { %1998 = vmatprep.subr.bf16.mxu0 %v2750_v15  ;;  %426 = vperm.xlu0 %2279, %v360_v27  }
  0x78   :  { %431 = vperm.xlu1 %2280, %v361_v29  }
  0x79   :  { %2027 = vmatpush3.bf16.msra.mxu1 %v2302_v36 }
  0x7a   :  { %1999 = vmatpush3.bf16.msra.mxu0 %v2750_v15  ;;  %2028 = vmatprep.subr.bf16.mxu1 %v2303_v41 }
  0x7b   :  { %436 = vperm.xlu0 %2279, %v362_v32  }
  0x7c   :  { %441 = vperm.xlu1 %2280, %v363_v34  }
  0x7d   :  { %2001 = vmatmul.mubr.bf16.vlgmr.msra.gmra.mrb[0].mxu0 %v2290_v21  ;;  %2029 = vmatpush3.bf16.msra.mxu1 %v2303_v41 }
  0x7e   :  { %2004 = vmatprep.mubr.bf16.mxu0 %v2291_v23  ;;  %2030 = vmatprep.subr.bf16.mxu1 %v2304_v44 }
  0x7f   :  { %1016 = vperm.xlu0 %2279, %v998_v35  }
  0x80   :  { %1021 = vperm.xlu1 %2280, %v999_v37  }
  0x81   :  { %2031 = vmatpush3.bf16.msra.mxu1 %v2304_v44 }
  0x82   :  { %2048 = vmatprep.subr.bf16.mxu1 %v2305_v48 }
  0x83   :  { %1026 = vperm.xlu0 %2279, %v1000_v40  }
  0x84   :  { %1031 = vperm.xlu1 %2280, %v1001_v42   ;;  %2033 = vmatmul.mubr.bf16.vlgmr.msra.gmra.mrb[0].mxu1 %v2688_v2 }
  0x85   :  { %2005 = vmatmul.mubr.bf16.gmra.mrb[4].mxu0 %v2292_v30  ;;  %2049 = vmatpush3.bf16.msra.mxu1 %v2305_v48 }
  0x86   :  { %2008 = vmatprep.mubr.bf16.mxu0 %v2293_v31  ;;  %2036 = vmatprep.mubr.bf16.mxu1 %v2694_v3 }
  0x87   :  { %1036 = vperm.xlu0 %2279, %v1002_v43   ;;  %2050 = vmatprep.subr.bf16.mxu1 %v2306_v51 }
  0x88   :  { %1041 = vperm.xlu1 %2280, %v1003_v45  }
  0x89   :  { %2051 = vmatpush3.bf16.msra.mxu1 %v2306_v51 }
  0x8a   :  { %2052 = vmatprep.subr.bf16.mxu1 %v2307_v54 }
  0x8b   :  { %1046 = vperm.xlu0 %2279, %v1004_v47  }
  0x8c   :  { %1051 = vperm.xlu1 %2280, %v1005_v49   ;;  %2037 = vmatmul.mubr.bf16.gmra.mrb[4].mxu1 %v2700_v4 }
  0x8d   :  { %2009 = vmatmul.mubr.bf16.gmra.mrb[8].mxu0 %v2294_v38  ;;  %2053 = vmatpush3.bf16.msra.mxu1 %v2307_v54 }
  0x8e   :  { %2012 = vmatprep.mubr.bf16.mxu0 %v2295_v39  ;;  %2040 = vmatprep.mubr.bf16.mxu1 %v2711_v6 }
  0x8f   :  { %1056 = vperm.xlu0 %2279, %v1006_v50   ;;  %2054 = vmatprep.subr.bf16.mxu1 %v2308_v56 }
  0x90   :  { %1061 = vperm.xlu1 %2280, %v1007_v52  }
  0x91   :  { %2055 = vmatpush3.bf16.msra.mxu1 %v2308_v56 }
  0x92   :  { %2056 = vmatprep.subr.bf16.mxu1 %v2309_v59 }
  0x93   :  { %1066 = vperm.xlu0 %2279, %v1008_v53  }
  0x94   :  { %1071 = vperm.xlu1 %2280, %v1009_v55   ;;  %2041 = vmatmul.mubr.bf16.gmra.mrb[8].mxu1 %v2720_v8 }
  0x95   :  { %2013 = vmatmul.mubr.bf16.gmra.mrb[12].mxu0 %v2296_v46  ;;  %2057 = vmatpush3.bf16.msra.mxu1 %v2309_v59  ;;  %v1818_v59 = vld [vmem:[%s3026_s13] ss:$0 sm:$0xff] }
  0x96   :  { %2044 = vmatprep.mubr.bf16.mxu1 %v2737_v12  ;;  %2058 = vmatprep.subr.bf16.mxu1 %v2310_v62 }
  0x97   :  { %1076 = vperm.xlu0 %2279, %v1010_v57  }
  0x98   :  { %1081 = vperm.xlu1 %2280, %v1011_v58   ;;  %v2313_v58 = vld [vmem:[%s3014_s1] sm:$0xff]  }
  0x99   :  { %2059 = vmatpush3.bf16.msra.mxu1 %v2310_v62  ;;  %2096 = vmatprep.mubr.bf16.mxu0 %v2313_v58  ;;  %v2321_v58 = vld [vmem:[%s3014_s1 + $0x20] sm:$0xff]  }
  0x9a   :  { %2060 = vmatprep.subr.bf16.mxu1 %v2311_v0 }
  0x9b   :  { %1086 = vperm.xlu0 %2279, %v1012_v60  }
  0x9c   :  { %1091 = vperm.xlu1 %2280, %v1013_v61   ;;  %2045 = vmatmul.mubr.bf16.gmra.mrb[12].mxu1 %v2750_v15 }
  0x9d   :  { %2061 = vmatpush3.bf16.msra.mxu1 %v2311_v0 }
  0x9e   :  { %2062 = vmatprep.subr.bf16.mxu1 %v2312_v1 }
  0x9f   :  { %1531 = vperm.xlu0 %2279, %v1528_v63  }
  0xa1   :  { %2063 = vmatpush3.bf16.msra.mxu1 %v2312_v1 }
  0xdd   :  { %v367_v2 = vpop.permute.xlu0 %366 }
  0xde   :  { %v377_v3 = vpop.permute.xlu1 %376 }
  0xe2   :  { %v372_v4 = vpop.permute.xlu0 %371 }
  0xe3   :  { %v382_v5 = vpop.permute.xlu1 %381 }
  0xe6   :  { %v387_v6 = vpop.permute.xlu0 %386 }
  0xe7   :  { %v392_v7 = vpop.permute.xlu1 %391 }
  0xea   :  { %v397_v9 = vpop.permute.xlu0 %396 }
  0xeb   :  { %v402_v11 = vpop.permute.xlu1 %401 }
  0xee   :  { %v407_v20 = vpop.permute.xlu0 %406 }
  0xef   :  { %v412_v21 = vpop.permute.xlu1 %411 }
  0xf2   :  { %v417_v30 = vpop.permute.xlu0 %416 }
  0xf3   :  { %v422_v32 = vpop.permute.xlu1 %421 }
  0xf6   :  { %v427_v37 = vpop.permute.xlu0 %426 }
  0xf7   :  { %v432_v41 = vpop.permute.xlu1 %431 }
  0xfa   :  { %v437_v47 = vpop.permute.xlu0 %436 }
  0xfb   :  { %v442_v49 = vpop.permute.xlu1 %441 }
 0x150   :  { %v2002_v8 = vpop.f32.mrb[0].mxu0 }
 0x151   :  { %v285_v10 = vpop.f32.mrb[1].mxu0  ;;  %v446_v13 = vmul.f32 %v2002_v8, %v377_v3 }
 0x152   :  { %v2003_v12 = vpop.f32.mrb[2].mxu0  ;;  %v444_v16 = vmul.f32 %v367_v2, %v285_v10 }
 0x153   :  { %v447_v14 = vmul.f32 %v2003_v12, %v382_v5  ;;  %v288_v15 = vpop.f32.mrb[3].mxu0 }
 0x154   :  { %v445_v17 = vmul.f32 %v372_v4, %v288_v15 }
 0x155   :  { %v461_v18 = vpack.c.bf16 %v447_v14, %v446_v13 }
 0x156   :  { %v460_v19 = vpack.c.bf16 %v445_v17, %v444_v16 }
 0x158   :  { %v2006_v22 = vpop.f32.mrb[4].mxu0  ;;  %2064 = vmatprep.mubr.bf16.mxu1 %v460_v19 }
 0x159   :  { %v301_v23 = vpop.f32.mrb[5].mxu0  ;;  %2065 = vmatmul.mubr.bf16.vlgmr.msra.gmra.mrb[0].mxu1 %v461_v18  ;;  %v450_v25 = vmul.f32 %v2006_v22, %v397_v9 }
 0x15a   :  { %v2007_v24 = vpop.f32.mrb[6].mxu0  ;;  %v448_v28 = vmul.f32 %v387_v6, %v301_v23 }
 0x15b   :  { %v451_v26 = vmul.f32 %v2007_v24, %v402_v11  ;;  %v304_v27 = vpop.f32.mrb[7].mxu0 }
 0x15c   :  { %v449_v29 = vmul.f32 %v392_v7, %v304_v27 }
 0x15d   :  { %v463_v31 = vpack.c.bf16 %v451_v26, %v450_v25 }
 0x15e   :  { %v462_v33 = vpack.c.bf16 %v449_v29, %v448_v28 }
 0x160   :  { %v2010_v34 = vpop.f32.mrb[8].mxu0  ;;  %2068 = vmatprep.mubr.bf16.mxu1 %v462_v33 }
 0x161   :  { %v317_v35 = vpop.f32.mrb[9].mxu0  ;;  %2069 = vmatmul.mubr.bf16.gmra.mrb[4].mxu1 %v463_v31  ;;  %v454_v38 = vmul.f32 %v2010_v34, %v417_v30 }
 0x162   :  { %v2011_v36 = vpop.f32.mrb[10].mxu0  ;;  %v452_v42 = vmul.f32 %v407_v20, %v317_v35 }
 0x163   :  { %v455_v39 = vmul.f32 %v2011_v36, %v422_v32  ;;  %v320_v40 = vpop.f32.mrb[11].mxu0 }
 0x164   :  { %v453_v43 = vmul.f32 %v412_v21, %v320_v40 }
 0x165   :  { %v465_v44 = vpack.c.bf16 %v455_v39, %v454_v38 }
 0x166   :  { %v464_v45 = vpack.c.bf16 %v453_v43, %v452_v42 }
 0x168   :  { %v2014_v46 = vpop.f32.mrb[12].mxu0  ;;  %2072 = vmatprep.mubr.bf16.mxu1 %v464_v45 }
 0x169   :  { %v333_v48 = vpop.f32.mrb[13].mxu0  ;;  %2073 = vmatmul.mubr.bf16.gmra.mrb[8].mxu1 %v465_v44  ;;  %v458_v51 = vmul.f32 %v2014_v46, %v437_v47 }
 0x16a   :  { %v2015_v50 = vpop.f32.mrb[14].mxu0  ;;  %v456_v54 = vmul.f32 %v427_v37, %v333_v48 }
 0x16b   :  { %v459_v52 = vmul.f32 %v2015_v50, %v442_v49  ;;  %v336_v53 = vpop.f32.mrb[15].mxu0 }
 0x16c   :  { %v457_v55 = vmul.f32 %v432_v41, %v336_v53  ;;  %v2314_v53 = vld [vmem:[%s3014_s1 + $0x8] sm:$0xff]  }
 0x16d   :  { %v467_v56 = vpack.c.bf16 %v459_v52, %v458_v51  ;;  %v2315_v52 = vld [vmem:[#allocation8] sm:$0xff]  }
 0x16e   :  { %v466_v57 = vpack.c.bf16 %v457_v55, %v456_v54  ;;  %v2317_v54 = vld [vmem:[%s3014_s1 + $0x10] sm:$0xff]   ;;  %v2316_v55 = vld [vmem:[#allocation8 + $0x8] sm:$0xff]  }
 0x170   :  { %2076 = vmatprep.mubr.bf16.mxu1 %v466_v57  ;;  %v2318_v57 = vld [vmem:[%s3014_s1 + $0x18] sm:$0xff]  }
 0x171   :  { %2077 = vmatmul.mubr.bf16.gmra.mrb[12].mxu1 %v467_v56  ;;  %v2319_v56 = vld [vmem:[#allocation8 + $0x10] sm:$0xff]  }
 0x22c   :  { %v2066_v60 = vpop.f32.mrb[0].mxu1 }
 0x22d   :  { %v799_v61 = vadd.f32 %v2066_v60, %v1818_v59  ;;  %v727_v62 = vpop.f32.mrb[1].mxu1  ;;  %v2323_v60 = vld [vmem:[#allocation8 + $0x20] sm:$0xff]  }
 0x22e   :  { %v797_v63 = vadd.f32 %v1818_v59, %v727_v62  ;;  %v2067_v0 = vpop.f32.mrb[2].mxu1  ;;  %v2325_v62 = vld [vmem:[%s3014_s1 + $0x30] sm:$0xff]  }
 0x22f   :  { %v800_v1 = vadd.f32 %v2067_v0, %v1818_v59  ;;  %v730_v2 = vpop.f32.mrb[3].mxu1  ;;  %v815_v4 = vmax.f32 %v799_v61, 0.0  ;;  %v2322_v61 = vld [vmem:[%s3014_s1 + $0x28] sm:$0xff]   ;;  %v2327_v0 = vld [vmem:[#allocation8 + $0x30] sm:$0xff]  }
 0x230   :  { %v798_v3 = vadd.f32 %v1818_v59, %v730_v2  ;;  %v813_v6 = vmax.f32 %v797_v63, 0.0  ;;  %v2324_v63 = vld [vmem:[#allocation8 + $0x28] sm:$0xff]   ;;  %v2328_v2 = vld [vmem:[#allocation8 + $0x38] sm:$0xff]  }
 0x231   :  { %v816_v5 = vmax.f32 %v800_v1, 0.0  ;;  %v2326_v1 = vld [vmem:[%s3014_s1 + $0x38] sm:$0xff]  }
 0x232   :  { %v814_v7 = vmax.f32 %v798_v3, 0.0  ;;  %v2329_v3 = vld [vmem:[#allocation2] sm:$0xff]  }
 0x233   :  { %v2894_v8 = vpack.c.bf16 %v816_v5, %v815_v4  ;;  %v2330_v4 = vld [vmem:[#allocation2 + $0x8] sm:$0xff]   ;;  %v2331_v5 = vld [vmem:[#allocation2 + $0x10] sm:$0xff]  }
 0x234   :  { %v2896_v9 = vpack.c.bf16 %v814_v7, %v813_v6  ;;  %v2070_v10 = vpop.f32.mrb[4].mxu1  ;;  %v2332_v6 = vld [vmem:[#allocation2 + $0x18] sm:$0xff]   ;;  %v2333_v7 = vld [vmem:[#allocation2 + $0x20] sm:$0xff]  }
 0x235   :  { %v803_v11 = vadd.f32 %v2070_v10, %v1818_v59  ;;  %v743_v12 = vpop.f32.mrb[5].mxu1  ;;  %v2336_v10 = vld [vmem:[#allocation2 + $0x38] sm:$0xff]  }
 0x236   :  { %v801_v13 = vadd.f32 %v1818_v59, %v743_v12  ;;  %v2071_v14 = vpop.f32.mrb[6].mxu1  ;;  %2080 = vmatprep.subr.bf16.mxu0 %v2896_v9  ;;  %v1022_v12 = vpop.permute.xlu1 %1021 }
 0x237   :  { %v804_v15 = vadd.f32 %v2071_v14, %v1818_v59  ;;  %v746_v16 = vpop.f32.mrb[7].mxu1  ;;  %2081 = vmatpush3.bf16.msra.mxu0 %v2896_v9  ;;  %v819_v18 = vmax.f32 %v803_v11, 0.0  ;;  %v1017_v11 = vpop.permute.xlu0 %1016 }
 0x238   :  { %v802_v17 = vadd.f32 %v1818_v59, %v746_v16  ;;  %2082 = vmatprep.subr.bf16.mxu0 %v2894_v8  ;;  %v817_v20 = vmax.f32 %v801_v13, 0.0 }
 0x239   :  { %v820_v19 = vmax.f32 %v804_v15, 0.0 }
 0x23a   :  { %v818_v21 = vmax.f32 %v802_v17, 0.0  ;;  %v1032_v14 = vpop.permute.xlu1 %1031 }
 0x23b   :  { %v2901_v22 = vpack.c.bf16 %v820_v19, %v819_v18  ;;  %2083 = vmatpush3.bf16.msra.mxu0 %v2894_v8  ;;  %v1027_v13 = vpop.permute.xlu0 %1026 }
 0x23c   :  { %v2904_v23 = vpack.c.bf16 %v818_v21, %v817_v20  ;;  %v2074_v24 = vpop.f32.mrb[8].mxu1 }
 0x23d   :  { %v807_v25 = vadd.f32 %v2074_v24, %v1818_v59  ;;  %v759_v26 = vpop.f32.mrb[9].mxu1 }
 0x23e   :  { %v805_v27 = vadd.f32 %v1818_v59, %v759_v26  ;;  %v2075_v28 = vpop.f32.mrb[10].mxu1  ;;  %2084 = vmatprep.subr.bf16.mxu0 %v2904_v23  ;;  %v1042_v16 = vpop.permute.xlu1 %1041 }
 0x23f   :  { %v808_v29 = vadd.f32 %v2075_v28, %v1818_v59  ;;  %v762_v30 = vpop.f32.mrb[11].mxu1  ;;  %2085 = vmatpush3.bf16.msra.mxu0 %v2904_v23  ;;  %v823_v32 = vmax.f32 %v807_v25, 0.0  ;;  %v1037_v15 = vpop.permute.xlu0 %1036 }
 0x240   :  { %v806_v31 = vadd.f32 %v1818_v59, %v762_v30  ;;  %2086 = vmatprep.subr.bf16.mxu0 %v2901_v22  ;;  %v821_v34 = vmax.f32 %v805_v27, 0.0 }
 0x241   :  { %v824_v33 = vmax.f32 %v808_v29, 0.0 }
 0x242   :  { %v822_v35 = vmax.f32 %v806_v31, 0.0  ;;  %v1052_v20 = vpop.permute.xlu1 %1051 }
 0x243   :  { %v2909_v36 = vpack.c.bf16 %v824_v33, %v823_v32  ;;  %2087 = vmatpush3.bf16.msra.mxu0 %v2901_v22  ;;  %v1047_v18 = vpop.permute.xlu0 %1046 }
 0x244   :  { %v2912_v37 = vpack.c.bf16 %v822_v35, %v821_v34  ;;  %v2078_v38 = vpop.f32.mrb[12].mxu1 }
 0x245   :  { %v811_v39 = vadd.f32 %v2078_v38, %v1818_v59  ;;  %v775_v40 = vpop.f32.mrb[13].mxu1 }
 0x246   :  { %v809_v41 = vadd.f32 %v1818_v59, %v775_v40  ;;  %v2079_v42 = vpop.f32.mrb[14].mxu1  ;;  %2088 = vmatprep.subr.bf16.mxu0 %v2912_v37  ;;  %v1062_v30 = vpop.permute.xlu1 %1061 }
 0x247   :  { %v812_v43 = vadd.f32 %v2079_v42, %v1818_v59  ;;  %v778_v44 = vpop.f32.mrb[15].mxu1  ;;  %2089 = vmatpush3.bf16.msra.mxu0 %v2912_v37  ;;  %v827_v46 = vmax.f32 %v811_v39, 0.0  ;;  %v1057_v29 = vpop.permute.xlu0 %1056 }
 0x248   :  { %v810_v45 = vadd.f32 %v1818_v59, %v778_v44  ;;  %2090 = vmatprep.subr.bf16.mxu0 %v2909_v36  ;;  %v825_v48 = vmax.f32 %v809_v41, 0.0  ;;  %v2320_v59 = vld [vmem:[#allocation8 + $0x18] sm:$0xff]  }
 0x249   :  { %v828_v47 = vmax.f32 %v812_v43, 0.0 }
 0x24a   :  { %v826_v49 = vmax.f32 %v810_v45, 0.0  ;;  %v1072_v41 = vpop.permute.xlu1 %1071 }
 0x24b   :  { %v2917_v50 = vpack.c.bf16 %v828_v47, %v827_v46  ;;  %2091 = vmatpush3.bf16.msra.mxu0 %v2909_v36  ;;  %v1067_v39 = vpop.permute.xlu0 %1066 }
 0x24c   :  { %v2920_v51 = vpack.c.bf16 %v826_v49, %v825_v48 }
 0x24e   :  { %2092 = vmatprep.subr.bf16.mxu0 %v2920_v51 }
 0x24f   :  { %2093 = vmatpush3.bf16.msra.mxu0 %v2920_v51  ;;  %v1077_v46 = vpop.permute.xlu0 %1076 }
 0x250   :  { %2094 = vmatprep.subr.bf16.mxu0 %v2917_v50 }
 0x253   :  { %2095 = vmatpush3.bf16.msra.mxu0 %v2917_v50 }
 0x254   :  { %2112 = vmatprep.subr.bf16.mxu0 %v2315_v52 }
 0x256   :  { %2097 = vmatmul.mubr.bf16.vlgmr.msra.gmra.mrb[16].mxu0 %v2314_v53 }
 0x257   :  { %2113 = vmatpush3.bf16.msra.mxu0 %v2315_v52  ;;  %2100 = vmatprep.mubr.bf16.mxu0 %v2317_v54 }
 0x258   :  { %2114 = vmatprep.subr.bf16.mxu0 %v2316_v55 }
 0x25b   :  { %2115 = vmatpush3.bf16.msra.mxu0 %v2316_v55 }
 0x25c   :  { %2116 = vmatprep.subr.bf16.mxu0 %v2319_v56 }
 0x25e   :  { %2101 = vmatmul.mubr.bf16.gmra.mrb[20].mxu0 %v2318_v57 }
 0x25f   :  { %2117 = vmatpush3.bf16.msra.mxu0 %v2319_v56  ;;  %2104 = vmatprep.mubr.bf16.mxu0 %v2321_v58  ;;  %v1087_v56 = vpop.permute.xlu0 %1086 }
 0x260   :  { %2118 = vmatprep.subr.bf16.mxu0 %v2320_v59 }
 0x263   :  { %2119 = vmatpush3.bf16.msra.mxu0 %v2320_v59 }
 0x264   :  { %2120 = vmatprep.subr.bf16.mxu0 %v2323_v60 }
 0x266   :  { %2105 = vmatmul.mubr.bf16.gmra.mrb[24].mxu0 %v2322_v61 }
 0x267   :  { %2121 = vmatpush3.bf16.msra.mxu0 %v2323_v60  ;;  %2108 = vmatprep.mubr.bf16.mxu0 %v2325_v62 }
 0x268   :  { %2122 = vmatprep.subr.bf16.mxu0 %v2324_v63 }
 0x26b   :  { %2123 = vmatpush3.bf16.msra.mxu0 %v2324_v63 }
 0x26c   :  { %2124 = vmatprep.subr.bf16.mxu0 %v2327_v0 }
 0x26e   :  { %2109 = vmatmul.mubr.bf16.gmra.mrb[28].mxu0 %v2326_v1 }
 0x26f   :  { %2125 = vmatpush3.bf16.msra.mxu0 %v2327_v0  ;;  %2128 = vmatprep.mubr.bf16.mxu0 %v2896_v9  ;;  %v2334_v9 = vld [vmem:[#allocation2 + $0x28] sm:$0xff]  }
 0x270   :  { %2126 = vmatprep.subr.bf16.mxu0 %v2328_v2 }
 0x273   :  { %2127 = vmatpush3.bf16.msra.mxu0 %v2328_v2 }
 0x274   :  { %2144 = vmatprep.subr.bf16.mxu0 %v2329_v3 }
 0x276   :  { %2129 = vmatmul.mubr.bf16.vlgmr.msra.gmra.mrb[32].mxu0 %v2894_v8  ;;  %v2335_v8 = vld [vmem:[#allocation2 + $0x30] sm:$0xff]  }
 0x277   :  { %2132 = vmatprep.mubr.bf16.mxu0 %v2904_v23  ;;  %2145 = vmatpush3.bf16.msra.mxu0 %v2329_v3  ;;  %v2505_v3 = vmov 0.0  }
 0x278   :  { %2146 = vmatprep.subr.bf16.mxu0 %v2330_v4  ;;  %2176 = vmatprep.subr.bf16.mxu1 %v2505_v3 }
 0x279   :  { %2192 = vmatprep.mubr.msk.bf16.mxu1 %vm2506_vm0, %v2505_v3 }
 0x27b   :  { %2147 = vmatpush3.bf16.msra.mxu0 %v2330_v4  ;;  %v2345_v4 = vld [vmem:[#allocation5] sm:$0xff]  }
 0x27c   :  { %2148 = vmatprep.subr.bf16.mxu0 %v2331_v5 }
 0x27e   :  { %2133 = vmatmul.mubr.bf16.gmra.mrb[36].mxu0 %v2901_v22 }
 0x27f   :  { %2136 = vmatprep.mubr.bf16.mxu0 %v2912_v37  ;;  %2149 = vmatpush3.bf16.msra.mxu0 %v2331_v5  ;;  %v2346_v5 = vld [vmem:[#allocation5 + $0x8] sm:$0xff]  }
 0x280   :  { %2150 = vmatprep.subr.bf16.mxu0 %v2332_v6 }
 0x283   :  { %2151 = vmatpush3.bf16.msra.mxu0 %v2332_v6  ;;  %v2347_v6 = vld [vmem:[#allocation5 + $0x10] sm:$0xff]  }
 0x284   :  { %2152 = vmatprep.subr.bf16.mxu0 %v2333_v7 }
 0x286   :  { %2137 = vmatmul.mubr.bf16.gmra.mrb[40].mxu0 %v2909_v36 }
 0x287   :  { %2140 = vmatprep.mubr.bf16.mxu0 %v2920_v51  ;;  %2153 = vmatpush3.bf16.msra.mxu0 %v2333_v7  ;;  %v2348_v7 = vld [vmem:[#allocation5 + $0x18] sm:$0xff]  }
 0x288   :  { %2154 = vmatprep.subr.bf16.mxu0 %v2334_v9 }
 0x28b   :  { %2155 = vmatpush3.bf16.msra.mxu0 %v2334_v9  ;;  %v2349_v9 = vld [vmem:[#allocation5 + $0x20] sm:$0xff]  }
 0x28c   :  { %2156 = vmatprep.subr.bf16.mxu0 %v2335_v8 }
 0x28e   :  { %2141 = vmatmul.mubr.bf16.gmra.mrb[44].mxu0 %v2917_v50  ;;  %v1082_v50 = vpop.permute.xlu1 %1081 }
 0x28f   :  { %2157 = vmatpush3.bf16.msra.mxu0 %v2335_v8  ;;  %v2350_v8 = vld [vmem:[#allocation5 + $0x28] sm:$0xff]  }
 0x290   :  { %2158 = vmatprep.subr.bf16.mxu0 %v2336_v10 }
 0x292   :  { %v1092_v58 = vpop.permute.xlu1 %1091 }
 0x293   :  { %2159 = vmatpush3.bf16.msra.mxu0 %v2336_v10  ;;  %v2351_v10 = vld [vmem:[#allocation5 + $0x30] sm:$0xff]  }
 0x294   :  { %2216 = vmatprep.subr.bf16.mxu0 %v2505_v3 }
 0x329   :  { %v2098_v17 = vpop.f32.mrb[16].mxu0 }
 0x32a   :  { %v935_v19 = vpop.f32.mrb[17].mxu0  ;;  %v1096_v22 = vmul.f32 %v2098_v17, %v1027_v13 }
 0x32b   :  { %v2099_v21 = vpop.f32.mrb[18].mxu0  ;;  %v1094_v25 = vmul.f32 %v1017_v11, %v935_v19  ;;  %v1843_v11 = vld [vmem:[%s3027_s14] ss:$0 sm:$0xff] }
 0x32c   :  { %v1097_v23 = vmul.f32 %v2099_v21, %v1032_v14  ;;  %v938_v24 = vpop.f32.mrb[19].mxu0 }
 0x32d   :  { %v1095_v26 = vmul.f32 %v1022_v12, %v938_v24 }
 0x32e   :  { %v1111_v27 = vpack.c.bf16 %v1097_v23, %v1096_v22 }
 0x32f   :  { %v1110_v28 = vpack.c.bf16 %v1095_v26, %v1094_v25 }
 0x331   :  { %v2102_v31 = vpop.f32.mrb[20].mxu0  ;;  %2160 = vmatprep.mubr.bf16.mxu0 %v1110_v28 }
 0x332   :  { %v951_v32 = vpop.f32.mrb[21].mxu0  ;;  %2161 = vmatmul.mubr.bf16.vlgmr.msra.gmra.mrb[32].mxu0 %v1111_v27  ;;  %v1100_v34 = vmul.f32 %v2102_v31, %v1047_v18 }
 0x333   :  { %v2103_v33 = vpop.f32.mrb[22].mxu0  ;;  %v1098_v37 = vmul.f32 %v1037_v15, %v951_v32  ;;  %2217 = vmatpush3.bf16.msra.mxu0 %v2345_v4 }
 0x334   :  { %v1101_v35 = vmul.f32 %v2103_v33, %v1052_v20  ;;  %v954_v36 = vpop.f32.mrb[23].mxu0  ;;  %2218 = vmatprep.subr.bf16.mxu0 %v2505_v3 }
 0x335   :  { %v1099_v38 = vmul.f32 %v1042_v16, %v954_v36 }
 0x336   :  { %v1113_v40 = vpack.c.bf16 %v1101_v35, %v1100_v34 }
 0x337   :  { %v1112_v42 = vpack.c.bf16 %v1099_v38, %v1098_v37  ;;  %2219 = vmatpush3.bf16.msra.mxu0 %v2346_v5  ;;  %v1487_v5 = vld [vmem:[%s3015_s2] sm:$0xf] }
 0x338   :  { %2220 = vmatprep.subr.bf16.mxu0 %v2505_v3 }
 0x339   :  { %v2106_v43 = vpop.f32.mrb[24].mxu0  ;;  %2164 = vmatprep.mubr.bf16.mxu0 %v1112_v42 }
 0x33a   :  { %v967_v44 = vpop.f32.mrb[25].mxu0  ;;  %2165 = vmatmul.mubr.bf16.gmra.mrb[36].mxu0 %v1113_v40  ;;  %v1104_v47 = vmul.f32 %v2106_v43, %v1067_v39 }
 0x33b   :  { %v2107_v45 = vpop.f32.mrb[26].mxu0  ;;  %v1102_v51 = vmul.f32 %v1057_v29, %v967_v44  ;;  %2221 = vmatpush3.bf16.msra.mxu0 %v2347_v6  ;;  %v2337_v6 = vld [vmem:[#allocation10] sm:$0xff]  }
 0x33c   :  { %v1105_v48 = vmul.f32 %v2107_v45, %v1072_v41  ;;  %v970_v49 = vpop.f32.mrb[27].mxu0  ;;  %2222 = vmatprep.subr.bf16.mxu0 %v2505_v3 }
 0x33d   :  { %v1103_v52 = vmul.f32 %v1062_v30, %v970_v49 }
 0x33e   :  { %v1115_v53 = vpack.c.bf16 %v1105_v48, %v1104_v47 }
 0x33f   :  { %v1114_v54 = vpack.c.bf16 %v1103_v52, %v1102_v51  ;;  %2223 = vmatpush3.bf16.msra.mxu0 %v2348_v7  ;;  %v2338_v7 = vld [vmem:[#allocation10 + $0x8] sm:$0xff]  }
 0x340   :  { %2224 = vmatprep.subr.bf16.mxu0 %v2505_v3 }
 0x341   :  { %v2110_v55 = vpop.f32.mrb[28].mxu0  ;;  %2168 = vmatprep.mubr.bf16.mxu0 %v1114_v54 }
 0x342   :  { %v983_v57 = vpop.f32.mrb[29].mxu0  ;;  %2169 = vmatmul.mubr.bf16.gmra.mrb[40].mxu0 %v1115_v53  ;;  %v1108_v60 = vmul.f32 %v2110_v55, %v1087_v56 }
 0x343   :  { %v2111_v59 = vpop.f32.mrb[30].mxu0  ;;  %v1106_v63 = vmul.f32 %v1077_v46, %v983_v57  ;;  %2225 = vmatpush3.bf16.msra.mxu0 %v2349_v9  ;;  %v2339_v9 = vld [vmem:[#allocation10 + $0x10] sm:$0xff]  }
 0x344   :  { %v1109_v61 = vmul.f32 %v2111_v59, %v1092_v58  ;;  %v986_v62 = vpop.f32.mrb[31].mxu0  ;;  %2226 = vmatprep.subr.bf16.mxu0 %v2505_v3 }
 0x345   :  { %v1107_v0 = vmul.f32 %v1082_v50, %v986_v62 }
 0x346   :  { %v1117_v1 = vpack.c.bf16 %v1109_v61, %v1108_v60 }
 0x347   :  { %v1116_v2 = vpack.c.bf16 %v1107_v0, %v1106_v63  ;;  %2227 = vmatpush3.bf16.msra.mxu0 %v2350_v8  ;;  %v2340_v8 = vld [vmem:[#allocation10 + $0x18] sm:$0xff]  }
 0x348   :  { %2228 = vmatprep.subr.bf16.mxu0 %v2505_v3 }
 0x349   :  { %2172 = vmatprep.mubr.bf16.mxu0 %v1116_v2 }
 0x34a   :  { %2173 = vmatmul.mubr.bf16.gmra.mrb[44].mxu0 %v1117_v1 }
 0x34b   :  { %2232 = vmatprep.mubr.msk.bf16.mxu0 %vm2506_vm0, %v2505_v3  ;;  %2229 = vmatpush3.bf16.msra.mxu0 %v2351_v10  ;;  %v2341_v10 = vld [vmem:[#allocation10 + $0x20] sm:$0xff]  }
 0x34c   :  { %2230 = vmatprep.subr.bf16.mxu0 %v2505_v3 }
 0x405   :  { %v2162_v12 = vpop.f32.mrb[32].mxu0 }
 0x406   :  { %v1449_v13 = vadd.f32 %v2162_v12, %v1843_v11  ;;  %v1377_v14 = vpop.f32.mrb[33].mxu0  ;;  %v2343_v12 = vld [vmem:[#allocation10 + $0x30] sm:$0xff]  }
 0x407   :  { %v1447_v15 = vadd.f32 %v1843_v11, %v1377_v14  ;;  %v2163_v16 = vpop.f32.mrb[34].mxu0  ;;  %v2352_v14 = vld [vmem:[#allocation5 + $0x38] sm:$0xff]  }
 0x408   :  { %v1450_v17 = vadd.f32 %v2163_v16, %v1843_v11  ;;  %v1380_v18 = vpop.f32.mrb[35].mxu0  ;;  %v1465_v20 = vmax.f32 %v1449_v13, 0.0  ;;  %v2344_v13 = vld [vmem:[#allocation10 + $0x38] sm:$0xff]   ;;  %2231 = vmatpush3.bf16.msra.mxu0 %v2352_v14 }
 0x409   :  { %v1448_v19 = vadd.f32 %v1843_v11, %v1380_v18  ;;  %v1463_v22 = vmax.f32 %v1447_v15, 0.0  ;;  %v1532_v15 = vpop.permute.xlu0 %1531 }
 0x40a   :  { %v1466_v21 = vmax.f32 %v1450_v17, 0.0 }
 0x40b   :  { %v1464_v23 = vmax.f32 %v1448_v19, 0.0 }
 0x40c   :  { %v1480_v24 = vpack.c.bf16 %v1466_v21, %v1465_v20 }
 0x40d   :  { %v2971_v25 = vpack.c.bf16 %v1464_v23, %v1463_v22  ;;  %v2166_v26 = vpop.f32.mrb[36].mxu0 }
 0x40e   :  { %v1453_v27 = vadd.f32 %v2166_v26, %v1843_v11  ;;  %v1393_v28 = vpop.f32.mrb[37].mxu0 }
 0x40f   :  { %v1451_v29 = vadd.f32 %v1843_v11, %v1393_v28  ;;  %v2167_v30 = vpop.f32.mrb[38].mxu0  ;;  %2177 = vmatpush3.bf16.msra.mxu1 %v2971_v25 }
 0x410   :  { %v1454_v31 = vadd.f32 %v2167_v30, %v1843_v11  ;;  %v1396_v32 = vpop.f32.mrb[39].mxu0  ;;  %2178 = vmatprep.subr.bf16.mxu1 %v2505_v3  ;;  %v1469_v34 = vmax.f32 %v1453_v27, 0.0  ;;  %v1752_v27 = vlaneseq }
 0x411   :  { %v1452_v33 = vadd.f32 %v1843_v11, %v1396_v32  ;;  %v1467_v36 = vmax.f32 %v1451_v29, 0.0 }
 0x412   :  { %v1470_v35 = vmax.f32 %v1454_v31, 0.0  ;;  %v1753_v28 = vand.u32 127, %v1752_v27 }
 0x413   :  { %v1468_v37 = vmax.f32 %v1452_v33, 0.0  ;;  %2179 = vmatpush3.bf16.msra.mxu1 %v1480_v24 }
 0x414   :  { %v1482_v38 = vpack.c.bf16 %v1470_v35, %v1469_v34  ;;  %2180 = vmatprep.subr.bf16.mxu1 %v2505_v3  ;;  %vm1754_vm1 = vcmp.lt.s32.totalorder %v1753_v28, 8 }
 0x415   :  { %v1481_v39 = vpack.c.bf16 %v1468_v37, %v1467_v36  ;;  %v2170_v40 = vpop.f32.mrb[40].mxu0 }
 0x416   :  { %v1457_v41 = vadd.f32 %v2170_v40, %v1843_v11  ;;  %v1409_v42 = vpop.f32.mrb[41].mxu0 }
 0x417   :  { %v1455_v43 = vadd.f32 %v1843_v11, %v1409_v42  ;;  %v2171_v44 = vpop.f32.mrb[42].mxu0  ;;  %2181 = vmatpush3.bf16.msra.mxu1 %v1481_v39 }
 0x418   :  { %v1458_v45 = vadd.f32 %v2171_v44, %v1843_v11  ;;  %v1412_v46 = vpop.f32.mrb[43].mxu0  ;;  %2182 = vmatprep.subr.bf16.mxu1 %v2505_v3  ;;  %v1473_v48 = vmax.f32 %v1457_v41, 0.0 }
 0x419   :  { %v1456_v47 = vadd.f32 %v1843_v11, %v1412_v46  ;;  %v1471_v50 = vmax.f32 %v1455_v43, 0.0 }
 0x41a   :  { %v1474_v49 = vmax.f32 %v1458_v45, 0.0 }
 0x41b   :  { %v1472_v51 = vmax.f32 %v1456_v47, 0.0  ;;  %2183 = vmatpush3.bf16.msra.mxu1 %v1482_v38 }
 0x41c   :  { %v1484_v52 = vpack.c.bf16 %v1474_v49, %v1473_v48  ;;  %2184 = vmatprep.subr.bf16.mxu1 %v2505_v3 }
 0x41d   :  { %v1483_v53 = vpack.c.bf16 %v1472_v51, %v1471_v50  ;;  %v2174_v54 = vpop.f32.mrb[44].mxu0 }
 0x41e   :  { %v1461_v55 = vadd.f32 %v2174_v54, %v1843_v11  ;;  %v1425_v56 = vpop.f32.mrb[45].mxu0 }
 0x41f   :  { %v1459_v57 = vadd.f32 %v1843_v11, %v1425_v56  ;;  %v2175_v58 = vpop.f32.mrb[46].mxu0  ;;  %2185 = vmatpush3.bf16.msra.mxu1 %v1483_v53 }
 0x420   :  { %v1462_v59 = vadd.f32 %v2175_v58, %v1843_v11  ;;  %v1428_v60 = vpop.f32.mrb[47].mxu0  ;;  %2186 = vmatprep.subr.bf16.mxu1 %v2505_v3  ;;  %v1477_v62 = vmax.f32 %v1461_v55, 0.0 }
 0x421   :  { %v1460_v61 = vadd.f32 %v1843_v11, %v1428_v60  ;;  %v1475_v0 = vmax.f32 %v1459_v57, 0.0  ;;  %v2342_v11 = vld [vmem:[#allocation10 + $0x28] sm:$0xff]  }
 0x422   :  { %v1478_v63 = vmax.f32 %v1462_v59, 0.0 }
 0x423   :  { %v1476_v1 = vmax.f32 %v1460_v61, 0.0  ;;  %2187 = vmatpush3.bf16.msra.mxu1 %v1484_v52 }
 0x424   :  { %v1486_v2 = vpack.c.bf16 %v1478_v63, %v1477_v62  ;;  %2188 = vmatprep.subr.bf16.mxu1 %v2505_v3 }
 0x425   :  { %v1485_v4 = vpack.c.bf16 %v1476_v1, %v1475_v0 }
 0x427   :  { %2189 = vmatpush3.bf16.msra.mxu1 %v1485_v4 }
 0x428   :  { %2190 = vmatprep.subr.bf16.mxu1 %v2505_v3 }
 0x42b   :  { %2191 = vmatpush3.bf16.msra.mxu1 %v1486_v2 }
 0x42c   :  { %2196 = vmatprep.subr.bf16.mxu1 %v2505_v3 }
 0x42e   :  { %2193 = vmatmul.mubr.bf16.vlgmr.msra.gmra.mrb[16].mxu1 %v1487_v5 }
 0x42f   :  { %2197 = vmatpush3.bf16.msra.mxu1 %v2337_v6  ;;  %2212 = vmatprep.mubr.msk.bf16.mxu1 %vm2506_vm0, %v2505_v3 }
 0x430   :  { %2198 = vmatprep.subr.bf16.mxu1 %v2505_v3 }
 0x433   :  { %2199 = vmatpush3.bf16.msra.mxu1 %v2338_v7 }
 0x434   :  { %2200 = vmatprep.subr.bf16.mxu1 %v2505_v3 }
 0x437   :  { %2201 = vmatpush3.bf16.msra.mxu1 %v2339_v9 }
 0x438   :  { %2202 = vmatprep.subr.bf16.mxu1 %v2505_v3 }
 0x43b   :  { %2203 = vmatpush3.bf16.msra.mxu1 %v2340_v8 }
 0x43c   :  { %2204 = vmatprep.subr.bf16.mxu1 %v2505_v3 }
 0x43f   :  { %2205 = vmatpush3.bf16.msra.mxu1 %v2341_v10 }
 0x440   :  { %2206 = vmatprep.subr.bf16.mxu1 %v2505_v3 }
 0x443   :  { %2207 = vmatpush3.bf16.msra.mxu1 %v2342_v11 }
 0x444   :  { %2208 = vmatprep.subr.bf16.mxu1 %v2505_v3 }
 0x447   :  { %2209 = vmatpush3.bf16.msra.mxu1 %v2343_v12 }
 0x448   :  { %2210 = vmatprep.subr.bf16.mxu1 %v2505_v3 }
 0x44b   :  { %2211 = vmatpush3.bf16.msra.mxu1 %v2344_v13 }
 0x44e   :  { %2213 = vmatmul.mubr.bf16.vlgmr.msra.gmra.mrb[20].mxu1 %v2971_v25  ;;  %v1860_v25 = vld [vmem:[%s3028_s15] ss:$0 sm:$0xff]  ;;  %s2507_s15 = smov [#allocation11]  }
 0x44f   :  { %s1775_s18 = sshll.u32 %s2507_s15, 4  ;;  %s1776_s18 = int_to_ptr.vmem [resolvable:$true] %s1775_s18 }
 0x450   :  { %s2467_s4 = scalar_lea.vmem %s1776_s18, 128  ;;  %p2472_p13 = scmp.lt.s32.totalorder %s1776_s18, %s1776_s18 }
 0x451   :  { %p2468_p12 = scmp.ne.s32.totalorder %s1776_s18, %s2467_s4  ;;  %p2473_p0 = scmp.lt.s32.totalorder %s2467_s4, %s2467_s4 }
 0x453   :  { %p2474_p1 = por %p2473_p0, %p2472_p13 }
 0x455   :  { %p2475_p2 = pnand %p2474_p1, %p2468_p12 }
 0x501   :  { %v1522_v16 = vpop.f32.mrb[16].mxu1 }
 0x502   :  { %v1534_v17 = vmul.f32 %v1532_v15, %v1522_v16  ;;  %v2194_v18 = vpop.f32.mrb[17].mxu1 }
 0x503   :  { %v1525_v19 = vpop.f32.mrb[18].mxu1 }
 0x504   :  { %v1535_v20 = vpack.c.bf16 %v1534_v17, %v1534_v17  ;;  %v2195_v21 = vpop.f32.mrb[19].mxu1 }
 0x506   :  { %2233 = vmatmul.mubr.bf16.vlgmr.msra.gmra.mrb[48].mxu0 %v1535_v20 }
 0x521   :  { %v1650_v22 = vpop.f32.mrb[20].mxu1 }
 0x522   :  { %v2214_v23 = vpop.f32.mrb[21].mxu1 }
 0x523   :  { %v1653_v24 = vpop.f32.mrb[22].mxu1 }
 0x524   :  { %v2215_v26 = vpop.f32.mrb[23].mxu1 }
 0x5d9   :  { %v1738_v3 = vpop.f32.mrb[48].mxu0 }
 0x5da   :  { %v1739_v29 = vadd.f32 %v1738_v3, %v1650_v22  ;;  %v2234_v30 = vpop.f32.mrb[49].mxu0 }
 0x5db   :  { %v1741_v31 = vpop.f32.mrb[50].mxu0 }
 0x5dc   :  { %v2235_v32 = vpop.f32.mrb[51].mxu0  ;;  %v1751_v33 = vadd.f32 %v1860_v25, %v1739_v29 }
 0x5de   :  { %v1755_v34 = vsel %vm1754_vm1, %v1751_v33, -inf }
 0x5df   :  { %1756 = vmax.xlane.f32.xlu1 %v1755_v34 }
 0x66c   :  { %v1757_v35 = vpop.xlane.xlu1 %1756 }
 0x66d   :  { %v1758_v36 = vsub.f32 %v1751_v33, %v1757_v35 }
 0x66f   :  { %v1759_v37 = vmul.f32 1.442695, %v1758_v36 }
 0x671   :  { %2353 = vpow2.f32 %v1759_v37 }
 0x67b   :  { %v2354_v38 = vpop.eup %2353 }
 0x67c   :  { %v1761_v39 = vsel %vm1754_vm1, %v2354_v38, 0.0 }
 0x67d   :  { %1762 = vadd.xlane.f32.xlu0 %v1761_v39 }
 0x70a   :  { %v1763_v40 = vpop.xlane.xlu0 %1762 }
 0x70b   :  { %2355 = vlog2.f32 %v1763_v40 }
 0x715   :  { %v2356_v41 = vpop.eup %2355 }
 0x716   :  { %v1765_v42 = vmul.f32 0.6931472, %v2356_v41 }
 0x718   :  { %v1766_v43 = vsub.f32 %v1758_v36, %v1765_v42 }
 0x71a   :  { %v1767_v44 = vsel %vm1754_vm1, %v1766_v43, 0.0 }
 0x71b   :  { %1768 = vst [vmem:[#allocation11] sm:$0xff] %v1767_v44 }
 0x71c   :  { %2478 = shalt.err (!%p2475_p2)
}
 0x71d   :  { %s2479_s30 = scalar_lea.hbm %s3029_s16, 128 }
 0x71e   :  { %p2480_p3 = scmp.ne.s32.totalorder %s3029_s16, %s2479_s30  ;;  %p2483_p4 = scmp.lt.u32.totalorder %s2479_s30, %s3029_s16 }
 0x720   :  { %p2485_p5 = pnand %p2483_p4, %p2480_p3 }
 0x722   :  { %2488 = shalt.err (!%p2485_p5)
}
 0x723   :  { %1778 = dma.vmem_to_hbm [thread:$0]  %s1776_s18, 128, %s3029_s16, [#allocation4]  }
 0x724   :  { %2495 = dma.done.wait [#allocation4], 128  }
 0x725   :  { %2496 = vsyncadd [#allocation4], 4294967168 }
 0x726   :  { %1782 = vsyncpa [#allocation3], 1 }
 0x727   :  { %1783 = vsyncpa [#allocation6], 1 }
 0x728   :  { %1784 = vsyncpa [#allocation9], 1 }
 0x729   :  { %1785 = vsyncpa [#allocation4], 1 }

</bundles_post_ra>
